<compile_context>
chip_gen: v7x
topology: tpu7x:2x2x1
jax: 0.10.0
libtpu: 0.0.40
codegen_flags: <defaults>
</compile_context>

<pallas_src>
import jax
import jax.numpy as jnp
from jax import lax
from jax.experimental import pallas as pl
from jax.experimental.pallas import tpu as pltpu


# Contract the last dim of both operands (A @ B.T without materializing B.T).
_NT = (((1,), (1,)), ((), ()))


def _cossim_kernel(pi_ref, pj_ref, o_ref):
    """One (tm, tn) tile of |cos(p_i, p_j)| from pre-normalized rows."""
    cos = lax.dot_general(pi_ref[...], pj_ref[...], _NT,
                          preferred_element_type=jnp.float32)
    o_ref[...] = jnp.abs(cos).astype(o_ref.dtype)


def _eucdis_kernel(pi_ref, pj_ref, sqi_ref, sqj_ref, invi_ref, o_ref):
    """One (tm, tn) tile of 1 - d[i,j] / max(||d_row_i||, 1e-12).

    sqi (tm,1), sqj (1,tn): precomputed squared norms; invi (tm,1): precomputed
    1/max(||d_row||,1e-12).  Single MXU NT matmul + VPU epilogue, O(tile) VMEM.
    """
    g = lax.dot_general(pi_ref[...], pj_ref[...], _NT,
                        preferred_element_type=jnp.float32)            # (tm, tn)
    d2 = jnp.maximum(sqi_ref[...] + sqj_ref[...] - 2.0 * g, 0.0)
    o_ref[...] = (1.0 - jnp.sqrt(d2) * invi_ref[...]).astype(o_ref.dtype)


def _round_up(x, m):
    return ((x + m - 1) // m) * m


def _pad_rows(x, n_pad):
    n = x.shape[0]
    if n_pad == n:
        return x
    return jnp.zeros((n_pad,) + x.shape[1:], x.dtype).at[:n].set(x)


def _vmem_limit_bytes() -> int:
    """Generation-aware scoped-VMEM limit: ~3/4 of per-core capacity, with headroom."""
    try:
        cap = int(getattr(pltpu.get_tpu_info(), "vmem_capacity_bytes"))
    except Exception:
        cap = 64 * 1024 * 1024   # conservative fallback (v7x physical)
    return max(32 * 1024 * 1024, min((cap * 3) // 4, 100 * 1024 * 1024))


def pref_sim_mat(p_u: jax.Array, mode: str, *, tm: int = 256, tn: int = 1024,
                 out_dtype=jnp.float32) -> jax.Array:
    """Pallas TPU implementation of PrefSimMat.forward(p_u, mode)."""
    if mode not in ("EucDis", "CosSim"):
        raise ValueError(f"unknown mode: {mode}")
    n, feat = p_u.shape

    # Per-axis tile sizing: full-extent block if N fits in one tile, otherwise an
    # aligned tile with padding bounded to <= one tile per axis (no lcm rounding).
    if n <= tm:
        tm_e, n_pad_r = n, n
    else:
        assert tm % 8 == 0, "row tile must be sublane (8) aligned"
        tm_e, n_pad_r = tm, _round_up(n, tm)
    if n <= tn:
        tn_e, n_pad_c = n, n
    else:
        assert tn % 128 == 0, "column tile must be lane (128) aligned"
        tn_e, n_pad_c = tn, _round_up(n, tn)

    gi, gj = n_pad_r // tm_e, n_pad_c // tn_e
    cparams = pltpu.CompilerParams(
        dimension_semantics=("parallel", "parallel"),
        vmem_limit_bytes=_vmem_limit_bytes(),
    )

    row_spec = pl.BlockSpec((tm_e, feat), lambda i, j: (i, 0))
    col_spec = pl.BlockSpec((tn_e, feat), lambda i, j: (j, 0))
    out_spec = pl.BlockSpec((tm_e, tn_e), lambda i, j: (i, j))
    out_shape = jax.ShapeDtypeStruct((n_pad_r, n_pad_c), out_dtype)

    # One-time O(N*D) prep in the wrapper (negligible vs the N^2 kernel work).
    p32 = p_u.astype(jnp.float32)
    sq = jnp.sum(p32 * p32, axis=-1)                                     # (n,)

    if mode == "CosSim":
        # 1/max(||x||, 1e-8) == rsqrt(max(||x||^2, 1e-16)).  Pre-normalize once,
        # cast back so bf16 inputs stay on the fast MXU path.
        inv = lax.rsqrt(jnp.maximum(sq, 1e-16))[:, None]
        p_hat = (p32 * inv).astype(p_u.dtype)
        out = pl.pallas_call(
            _cossim_kernel,
            out_shape=out_shape,
            grid=(gi, gj),
            in_specs=[row_spec, col_spec],
            out_specs=out_spec,
            compiler_params=cparams,
        )(_pad_rows(p_hat, n_pad_r), _pad_rows(p_hat, n_pad_c))
    else:  # EucDis
        # Analytic distance-matrix row norms (separable Gram identity):
        #   sum_j ||p_i - p_j||^2 = n*||p_i||^2 + sum_j ||p_j||^2 - 2 <p_i, sum_j p_j>
        # 1/max(||d_row||, 1e-12) == rsqrt(max(sum_j d2, 1e-24)) -> EUP, no divides.
        col_sum = jnp.sum(p32, axis=0)                                   # (D,)
        row_d2 = n * sq + jnp.sum(sq) - 2.0 * (p32 @ col_sum)            # (n,)
        inv_row = lax.rsqrt(jnp.maximum(row_d2, 1e-24))                  # (n,)

        sq_row = _pad_rows(sq, n_pad_r)[:, None]                         # (n_pad_r, 1)
        sq_col = _pad_rows(sq, n_pad_c)[None, :]                         # (1, n_pad_c)
        inv_r = _pad_rows(inv_row, n_pad_r)[:, None]                     # (n_pad_r, 1)

        out = pl.pallas_call(
            _eucdis_kernel,
            out_shape=out_shape,
            grid=(gi, gj),
            in_specs=[
                row_spec,
                col_spec,
                pl.BlockSpec((tm_e, 1), lambda i, j: (i, 0)),            # sq_row tile
                pl.BlockSpec((1, tn_e), lambda i, j: (0, j)),            # sq_col tile
                pl.BlockSpec((tm_e, 1), lambda i, j: (i, 0)),            # inv_row tile
            ],
            out_specs=out_spec,
            compiler_params=cparams,
        )(_pad_rows(p_u, n_pad_r), _pad_rows(p_u, n_pad_c), sq_row, sq_col, inv_r)

    if (n_pad_r, n_pad_c) != (n, n):
        out = out[:n, :n]
    return out


def _reference(p_u, mode):
    # Pure-JAX reference mirroring the PyTorch repeat_interleave / repeat logic.
    n = p_u.shape[0]
    r1 = jnp.repeat(p_u, n, axis=0)           # torch.repeat_interleave(dim=0)
    r2 = jnp.tile(p_u, (n, 1))                # .repeat(n, 1)
    if mode == "EucDis":
        dmat = jnp.linalg.norm(r1 - r2, axis=1).reshape(n, n)
        rn = jnp.maximum(jnp.linalg.norm(dmat, axis=-1, keepdims=True), 1e-12)
        return 1.0 - dmat / rn
    num = jnp.sum(r1 * r2, axis=1)
    den = (jnp.maximum(jnp.linalg.norm(r1, axis=1), 1e-8)
           * jnp.maximum(jnp.linalg.norm(r2, axis=1), 1e-8))
    return jnp.abs(num / den).reshape(n, n)


if __name__ == "__main__":
    key = jax.random.PRNGKey(0)
    k1, k2 = jax.random.split(key)

    # Case 1: tiny problem -> single full-extent block (grid (1, 1)).
    N1, D1 = 8, 32
    p_small = jax.random.normal(k1, (N1, D1), dtype=jnp.float32)
    for mode in ("EucDis", "CosSim"):
        out = jax.block_until_ready(pref_sim_mat(p_small, mode))
        ref = _reference(p_small, mode)
        assert out.shape == (N1, N1)
        assert jnp.allclose(out, ref, atol=2e-4, rtol=2e-4), f"{mode} small mismatch"

    # Case 2: exercise the tiled path (per-axis padding, 2-D grid, side inputs)
    # with deliberately small aligned tiles so it stays cheap at a small N.
    N2, D2 = 200, 32
    p_med = jax.random.normal(k2, (N2, D2), dtype=jnp.float32)
    for mode in ("EucDis", "CosSim"):
        out = jax.block_until_ready(pref_sim_mat(p_med, mode, tm=64, tn=128))
        ref = _reference(p_med, mode)
        assert out.shape == (N2, N2)
        assert jnp.allclose(out, ref, atol=2e-4, rtol=2e-4), f"{mode} tiled mismatch"

    print("KERNEL_OK")
</pallas_src>

<mosaic_0001>
module attributes {stable_mosaic.version = 11 : i64} {
  func.func @_eucdis_kernel(%arg0: i32, %arg1: i32, %arg2: memref<8x32xf32, #tpu.memory_space<vmem>>, %arg3: memref<8x32xf32, #tpu.memory_space<vmem>>, %arg4: memref<8x1xf32, #tpu.memory_space<vmem>>, %arg5: memref<1x8xf32, #tpu.memory_space<vmem>>, %arg6: memref<8x1xf32, #tpu.memory_space<vmem>>, %arg7: memref<8x8xf32, #tpu.memory_space<vmem>>) attributes {dimension_semantics = [#tpu.dimension_semantics<parallel>, #tpu.dimension_semantics<parallel>], iteration_bounds = array<i64: 1, 1>, scalar_prefetch = 0 : i64, scratch_operands = 0 : i64, tpu.core_type = #tpu.core_type<tc>, window_params = [{transform_indices = @transform_0, window_bounds = array<i64: 8, 32>}, {transform_indices = @transform_1, window_bounds = array<i64: 8, 32>}, {transform_indices = @transform_2, window_bounds = array<i64: 8, 1>}, {transform_indices = @transform_3, window_bounds = array<i64: 1, 8>}, {transform_indices = @transform_4, window_bounds = array<i64: 8, 1>}, {transform_indices = @transform_5, window_bounds = array<i64: 8, 8>}]} {
    %c0 = arith.constant 0 : index
    %c0_0 = arith.constant 0 : index
    %0 = vector.load %arg2[%c0, %c0_0] : memref<8x32xf32, #tpu.memory_space<vmem>>, vector<8x32xf32>
    %c0_1 = arith.constant 0 : index
    %c0_2 = arith.constant 0 : index
    %1 = vector.load %arg3[%c0_1, %c0_2] : memref<8x32xf32, #tpu.memory_space<vmem>>, vector<8x32xf32>
    %cst = arith.constant dense<0.000000e+00> : vector<8x8xf32>
    %2 = tpu.matmul %0, %1, %cst {dimension_numbers = #tpu.dot_dimension_numbers<[1], [1], [0], [0], [0, 0, 1, 0], [], []>} : vector<8x32xf32>, vector<8x32xf32>, vector<8x8xf32> -> vector<8x8xf32>
    %c0_3 = arith.constant 0 : index
    %c0_4 = arith.constant 0 : index
    %3 = vector.load %arg4[%c0_3, %c0_4] : memref<8x1xf32, #tpu.memory_space<vmem>>, vector<8x1xf32>
    %c0_5 = arith.constant 0 : index
    %c0_6 = arith.constant 0 : index
    %4 = vector.load %arg5[%c0_5, %c0_6] : memref<1x8xf32, #tpu.memory_space<vmem>>, vector<1x8xf32>
    %5 = vector.broadcast %3 : vector<8x1xf32> to vector<8x8xf32>
    %6 = vector.broadcast %4 : vector<1x8xf32> to vector<8x8xf32>
    %7 = arith.addf %5, %6 : vector<8x8xf32>
    %cst_7 = arith.constant 2.000000e+00 : f32
    %8 = vector.broadcast %cst_7 : f32 to vector<8x8xf32>
    %9 = arith.mulf %8, %2 : vector<8x8xf32>
    %10 = arith.subf %7, %9 : vector<8x8xf32>
    %cst_8 = arith.constant 0.000000e+00 : f32
    %11 = vector.broadcast %cst_8 : f32 to vector<8x8xf32>
    %12 = arith.maximumf %10, %11 : vector<8x8xf32>
    %13 = math.sqrt %12 : vector<8x8xf32>
    %c0_9 = arith.constant 0 : index
    %c0_10 = arith.constant 0 : index
    %14 = vector.load %arg6[%c0_9, %c0_10] : memref<8x1xf32, #tpu.memory_space<vmem>>, vector<8x1xf32>
    %15 = vector.broadcast %14 : vector<8x1xf32> to vector<8x8xf32>
    %16 = arith.mulf %13, %15 : vector<8x8xf32>
    %cst_11 = arith.constant 1.000000e+00 : f32
    %17 = vector.broadcast %cst_11 : f32 to vector<8x8xf32>
    %18 = arith.subf %17, %16 : vector<8x8xf32>
    %c0_12 = arith.constant 0 : index
    %c0_13 = arith.constant 0 : index
    %19 = vector.load %arg7[%c0_12, %c0_13] : memref<8x8xf32, #tpu.memory_space<vmem>>, vector<8x8xf32>
    tpu.vector_store %arg7[%c0_12, %c0_13], %18 {strides = array<i32>} : memref<8x8xf32, #tpu.memory_space<vmem>>, vector<8x8xf32>,
    return
  }
  func.func @transform_0(%arg0: i32, %arg1: i32) -> (i32, i32) {
    %c0_i32 = arith.constant 0 : i32
    %c0_i32_0 = arith.constant 0 : i32
    return %arg0, %c0_i32 : i32, i32
  }
  func.func @transform_1(%arg0: i32, %arg1: i32) -> (i32, i32) {
    %c0_i32 = arith.constant 0 : i32
    %c0_i32_0 = arith.constant 0 : i32
    return %arg1, %c0_i32 : i32, i32
  }
  func.func @transform_2(%arg0: i32, %arg1: i32) -> (i32, i32) {
    %c0_i32 = arith.constant 0 : i32
    %c0_i32_0 = arith.constant 0 : i32
    return %arg0, %c0_i32 : i32, i32
  }
  func.func @transform_3(%arg0: i32, %arg1: i32) -> (i32, i32) {
    %c0_i32 = arith.constant 0 : i32
    %c0_i32_0 = arith.constant 0 : i32
    return %c0_i32, %arg1 : i32, i32
  }
  func.func @transform_4(%arg0: i32, %arg1: i32) -> (i32, i32) {
    %c0_i32 = arith.constant 0 : i32
    %c0_i32_0 = arith.constant 0 : i32
    return %arg0, %c0_i32 : i32, i32
  }
  func.func @transform_5(%arg0: i32, %arg1: i32) -> (i32, i32) {
    %c0_i32 = arith.constant 0 : i32
    return %arg0, %arg1 : i32, i32
  }
}

</mosaic_0001>

<bundles_post_ra>
// kernel: tpu_custom_call.1
= control target key start
LH: loop header
LB: loop body
LE: loop exit
PB: predicated region body
PF: predicated region fallthrough
CT: control target
= control target key end

     0   :  { %vm23_vm0 = vcmask 261120   ;;  %v189_v1 = vmov 0.0   ;;  %vm190_vm1 = vmmov 0   ;;  %v191_v4 = vmov 0   ;;  %s250_s0 = inlined_call_operand.vmem [shape: f32[8,32], index: 0, kind: input, shape index: {}]   ;;  %s251_s1 = inlined_call_operand.vmem [shape: f32[8,32], index: 1, kind: input, shape index: {}]   ;;  %s252_s2 = inlined_call_operand.vmem [shape: f32[8,1], index: 2, kind: input, shape index: {}]   ;;  %s253_s3 = inlined_call_operand.vmem [shape: f32[1,8], index: 3, kind: input, shape index: {}]   ;;  %s254_s4 = inlined_call_operand.vmem [shape: f32[8,1], index: 4, kind: input, shape index: {}]   ;;  %s255_s5 = inlined_call_operand.hbm [shape: f32[8,8], index: 5, kind: output, shape index: {}]  }
   0x1   :  { %v22_v0 = vld [vmem:[%s251_s1] sm:$0xff]  ;;  %153 = vmatprep.subr.mxu0 %v189_v1  ;;  %155 = vmatprep.mubr.msk.f32.mxu0 %vm190_vm1, %v189_v1 }
   0x2   :  { %v100_v2 = vld [vmem:[%s252_s2] sm:$0xff]  ;;  %154 = vmatpush3.xpose.msk.msra.mxu0 %vm23_vm0, %v22_v0  ;;  %162 = vset.pattern.permute.xlu0 %v191_v4 }
   0x3   :  { %v21_v3 = vld [vmem:[%s250_s0] sm:$0xff] }
   0x4   :  { %10 = vsyncpa [#allocation3], 0  ;;  %104 = vperm.xlu0 %162, %v100_v2   ;;  %v124_v5 = vld [vmem:[%s254_s4] sm:$0xff]  ;;  %s192_s0 = smov [#allocation2]   ;;  %vm132_vm4 = vcmask 64512  }
   0x5   :  { %156 = vmatmul.mubr.msk.f32.vlgmr.msra.gmra.mrb[0].mxu0 %vm23_vm0, %v21_v3  ;;  %v150_v6 = vld [vmem:[%s253_s3] ss:$0 sm:$0xff]  ;;  %s140_s2 = sshll.u32 %s192_s0, 4  ;;  %s141_s2 = int_to_ptr.vmem [resolvable:$true] %s140_s2 }
   0x6   :  { %s165_s3 = scalar_lea.vmem %s141_s2, 128  ;;  %p170_p1 = scmp.lt.s32.totalorder %s141_s2, %s141_s2 }
   0x7   :  { %p166_p0 = scmp.ne.s32.totalorder %s141_s2, %s165_s3  ;;  %p171_p2 = scmp.lt.s32.totalorder %s165_s3, %s165_s3 }
   0x8   :  { %127 = vperm.xlu0 %162, %v124_v5  }
   0x9   :  { %p172_p3 = por %p171_p2, %p170_p1 }
   0xb   :  { %p173_p4 = pnand %p172_p3, %p166_p0 }
  0x83   :  { %v105_v7 = vpop.permute.xlu0 %104 }
  0x84   :  { %v113_v8 = vadd.f32 %v150_v6, %v105_v7 }
  0x87   :  { %v128_v18 = vpop.permute.xlu0 %127 }
  0xd8   :  { %v96_v9 = vpop.f32.mrb[0].mxu0 }
  0xd9   :  { %v114_v10 = vmul.f32 2.0, %v96_v9  ;;  %v157_v11 = vpop.f32.mrb[1].mxu0 }
  0xdb   :  { %v115_v12 = vsub.f32 %v113_v8, %v114_v10 }
  0xdd   :  { %v116_v13 = vmax.f32 %v115_v12, 0.0 }
  0xdf   :  { %163 = vrsqrt.f32 %v116_v13  ;;  %vm119_vm2 = vcmp.eq.f32.partialorder %v116_v13, inf  ;;  %v122_v16 = vand.u32 2147483648, %v116_v13  ;;  %vm121_vm3 = vcmp.eq.f32.partialorder %v116_v13, 0.0 }
  0xe9   :  { %v164_v14 = vpop.eup %163 }
  0xea   :  { %v118_v15 = vmul.f32 %v164_v14, %v116_v13 }
  0xec   :  { %v120_v17 = vsel %vm119_vm2, %v116_v13, %v118_v15 }
  0xed   :  { %v123_v19 = vsel %vm121_vm3, %v122_v16, %v120_v17 }
  0xee   :  { %v130_v20 = vmul.f32 %v128_v18, %v123_v19 }
  0xf0   :  { %v131_v21 = vsub.f32 1.0, %v130_v20 }
  0xf2   :  { %133 = vst.msk [vmem:[#allocation2] sm:$0xff] %vm132_vm4, %v131_v21 }
  0xf3   :  { %176 = shalt.err (!%p173_p4)
}
  0xf4   :  { %s177_s28 = scalar_lea.hbm %s255_s5, 128 }
  0xf5   :  { %p178_p5 = scmp.ne.s32.totalorder %s255_s5, %s177_s28  ;;  %p181_p6 = scmp.lt.u32.totalorder %s177_s28, %s255_s5 }
  0xf7   :  { %p183_p7 = pnand %p181_p6, %p178_p5 }
  0xf9   :  { %186 = shalt.err (!%p183_p7)
}
  0xfa   :  { %143 = dma.vmem_to_hbm [thread:$0]  %s141_s2, 128, %s255_s5, [#allocation3]  }
  0xfb   :  { %187 = dma.done.wait [#allocation3], 128  }
  0xfc   :  { %188 = vsyncadd [#allocation3], 4294967168 }
  0xfd   :  { %147 = vsyncpa [#allocation3], 1 }

</bundles_post_ra>
